<compile_context>
chip_gen: v5e
topology: v5e:2x2
jax: 0.10.0
libtpu: 0.0.40
codegen_flags: <defaults>
</compile_context>

<pallas_src>
import functools

import jax
import jax.numpy as jnp
from jax.experimental import pallas as pl
from jax.experimental.pallas import tpu as pltpu


def _round_up(n, m):
    return ((n + m - 1) // m) * m


def _proto_kernel(x_ref, c_ref, c2_ref, o_ref, *, T):
    # x_ref:  [TN, Dp] f32 tile (streamed / double-buffered over the grid)
    # c_ref:  [Dp, Cp] resident 2*center^T, pre-cast (bf16 or f32) on the host
    # c2_ref: [1,  Cp] f32 resident ||center||^2 (padded cols poisoned to 1e30)
    # o_ref:  [TN, Cp] lane-dense output tile
    x = x_ref[...]

    # ||x||^2 kept in f32 (cancellation-sensitive part of the distance).
    x2 = jnp.sum(x * x, axis=1, keepdims=True)                      # [TN, 1]

    # Cross term on the MXU with f32 accumulation.  The 2x scale and the
    # transpose are folded into the constant operand on the host, so there is
    # no per-step cast / XLU shuffle of the resident center.
    xl = x.astype(c_ref.dtype)
    xc2 = jax.lax.dot_general(                                      # = 2 * x @ center^T
        xl, c_ref[...],
        dimension_numbers=(((1,), (0,)), ((), ())),
        preferred_element_type=jnp.float32,
    )                                                               # [TN, Cp]

    sq = jnp.maximum(x2 + c2_ref[...] - xc2, 0.0)
    dist = jnp.sqrt(sq)                                             # cdist, p=2

    # Padded prototype columns: c2 == 1e30 -> dist ~ 1e15 -> exp underflows to 0.
    logits = -dist * T
    m = jnp.max(logits, axis=1, keepdims=True)
    e = jnp.exp(logits - m)
    denom = jnp.sum(e, axis=1, keepdims=True)
    # EUP approximate reciprocal + one Newton refinement (~f32-exact), keeps
    # the normalization off the VALU.
    r = pl.reciprocal(denom, approx=True)
    r = r * (2.0 - denom * r)
    o_ref[...] = (e * r).astype(o_ref.dtype)


def _vmem_budget_bytes():
    # Generation-aware budget: ~3/4 of physical VMEM (v5e/v6e: 128 MiB -> 96,
    # v7x: 64 MiB -> 48).  Fall back to the v7x-safe 48 MiB if unqueryable.
    try:
        cap = int(pltpu.get_tpu_info().vmem_capacity_bytes)
    except Exception:
        cap = 64 * 1024 * 1024
    return max(32 * 1024 * 1024, (cap * 3) // 4)


def proto_classifier_forward(x, center, T=1.0, use_bf16_matmul=True,
                             out_dtype=jnp.float32):
    """x: [N, D], center: [C, D] -> softmax(-cdist(x, center) * T, axis=1), [N, C]."""
    N, D = x.shape
    C, D2 = center.shape
    assert D == D2, "feature dims of x and center must match"

    D_pad = _round_up(D, 128)
    C_pad = _round_up(C, 128)

    # ---- constant operands: all per-prototype work is paid once on the host --
    c_f32 = center.astype(jnp.float32)
    # ||center||^2 in f32; poison padded columns so they vanish in the softmax.
    c2 = jnp.sum(c_f32 * c_f32, axis=1)                               # [C]
    c2 = jnp.pad(c2, (0, C_pad - C), constant_values=1e30)[None, :]   # [1, Cp]
    # Pre-transposed, pre-scaled (exact 2x) center in the matmul dtype.
    c_mat = jnp.pad(2.0 * c_f32.T, ((0, D_pad - D), (0, C_pad - C)))  # [Dp, Cp]
    if use_bf16_matmul:
        c_mat = c_mat.astype(jnp.bfloat16)

    # ---- x: avoid HBM round trips when already aligned -----------------------
    x_p = x if x.dtype == jnp.float32 else x.astype(jnp.float32)
    if D_pad != D:
        x_p = jnp.pad(x_p, ((0, 0), (0, D_pad - D)))
    N_work = N
    if N < 8:                      # tiny-batch corner: keep the row block >= 8
        x_p = jnp.pad(x_p, ((0, 8 - N), (0, 0)))
        N_work = 8

    # ---- row-tile size --------------------------------------------------------
    vmem_budget = _vmem_budget_bytes()
    c_item = 2 if use_bf16_matmul else 4
    # Constant-index inputs are still double-buffered by Pallas by default, so
    # count the resident operands twice (review: either single-buffer or
    # account for 2x -- we take the conservative accounting option).
    resident_bytes = 2 * (D_pad * C_pad * c_item) + 2 * (C_pad * 4)
    # Per row: double-buffered x tile + double-buffered out tile + ~4 live
    # f32 [TN, C_pad] elementwise temporaries (xc -> sq -> dist -> e chain).
    per_row_bytes = (2 * D_pad + 2 * C_pad + 4 * C_pad) * 4
    tn_cap = max(8, (vmem_budget - resident_bytes) // per_row_bytes)
    tn_max = 2048 if vmem_budget >= 80 * 1024 * 1024 else 512
    # Keep >= 4 grid steps where N allows it, so the "parallel" axis can feed
    # both v7x TensorCores and the x/out DMAs have compute to hide behind.
    grid_cap = max(8, _round_up(pl.cdiv(N_work, 4), 8))
    TN = max(8, min(tn_max, int(tn_cap), grid_cap))
    TN = (TN // 8) * 8
    grid = (pl.cdiv(N_work, TN),)   # partial last block handles the N remainder

    kernel = functools.partial(_proto_kernel, T=float(T))

    out = pl.pallas_call(
        kernel,
        out_shape=jax.ShapeDtypeStruct((N_work, C_pad), out_dtype),
        grid_spec=pltpu.PrefetchScalarGridSpec(
            num_scalar_prefetch=0,
            grid=grid,
            in_specs=[
                pl.BlockSpec((TN, D_pad), lambda i: (i, 0)),      # streamed rows
                pl.BlockSpec((D_pad, C_pad), lambda i: (0, 0)),   # resident 2*c^T
                pl.BlockSpec((1, C_pad), lambda i: (0, 0)),       # resident ||c||^2
            ],
            out_specs=pl.BlockSpec((TN, C_pad), lambda i: (i, 0)),
        ),
        compiler_params=pltpu.CompilerParams(
            dimension_semantics=("parallel",),
            vmem_limit_bytes=vmem_budget,
        ),
    )(x_p, c_mat, c2)

    if N_work != N or C_pad != C:
        out = out[:N, :C]
    return out


if __name__ == "__main__":
    key = jax.random.PRNGKey(0)
    kx, kc = jax.random.split(key)

    # Small shapes consistent with the module: N=8 samples, feature dim D=32,
    # size (number of prototypes / classes) C=16.
    N, D, C = 8, 32, 16
    x = jax.random.normal(kx, (N, D), dtype=jnp.float32)
    # Deterministic synthetic "center" (the module's init() would compute
    # class-mean features; here we just initialize deterministically).
    center = jax.random.normal(kc, (C, D), dtype=jnp.float32)

    out = proto_classifier_forward(x, center, T=1.0)
    out = jax.block_until_ready(out)

    # Reference A: same math with a matching bf16 MXU cross-term (the kernel's
    # 2x-folded bf16 operand is bit-equivalent to 2 * bf16-matmul).
    x2 = jnp.sum(x * x, axis=1, keepdims=True)
    c2 = jnp.sum(center * center, axis=1)[None, :]
    xc_bf16 = jax.lax.dot_general(
        x.astype(jnp.bfloat16), center.astype(jnp.bfloat16),
        dimension_numbers=(((1,), (1,)), ((), ())),
        preferred_element_type=jnp.float32)
    d_ref = jnp.sqrt(jnp.maximum(x2 + c2 - 2.0 * xc_bf16, 0.0))
    ref = jax.nn.softmax(-d_ref * 1.0, axis=1)

    # Reference B: pure-f32 semantics of torch.cdist + softmax (looser check,
    # bounds the bf16-cross-term error).
    d_f32 = jnp.sqrt(jnp.maximum(x2 + c2 - 2.0 * (x @ center.T), 0.0))
    ref_f32 = jax.nn.softmax(-d_f32 * 1.0, axis=1)

    assert out.shape == (N, C)
    assert jnp.allclose(out, ref, atol=1e-4), "mismatch vs bf16-matched reference"
    assert jnp.allclose(out, ref_f32, atol=5e-3), "mismatch vs f32 reference"
    # approx reciprocal + one Newton step -> normalization ~f32-exact.
    assert jnp.allclose(jnp.sum(out, axis=1), 1.0, atol=1e-4)

    print("KERNEL_OK")
</pallas_src>

<mosaic_0001>
module attributes {stable_mosaic.version = 11 : i64} {
  func.func @_proto_kernel(%arg0: i32, %arg1: memref<8x128xf32, #tpu.memory_space<vmem>>, %arg2: memref<128x128xbf16, #tpu.memory_space<vmem>>, %arg3: memref<1x128xf32, #tpu.memory_space<vmem>>, %arg4: memref<8x128xf32, #tpu.memory_space<vmem>>) attributes {dimension_semantics = [#tpu.dimension_semantics<parallel>], iteration_bounds = array<i64: 1>, scalar_prefetch = 0 : i64, scratch_operands = 0 : i64, tpu.core_type = #tpu.core_type<tc>, window_params = [{transform_indices = @transform_0, window_bounds = array<i64: 8, 128>}, {pipeline_mode = #tpu.pipeline_mode<synchronous>, transform_indices = @transform_1, window_bounds = array<i64: 128, 128>}, {pipeline_mode = #tpu.pipeline_mode<synchronous>, transform_indices = @transform_2, window_bounds = array<i64: 1, 128>}, {transform_indices = @transform_3, window_bounds = array<i64: 8, 128>}]} {
    %c0 = arith.constant 0 : index
    %c0_0 = arith.constant 0 : index
    %0 = vector.load %arg1[%c0, %c0_0] : memref<8x128xf32, #tpu.memory_space<vmem>>, vector<8x128xf32>
    %1 = arith.mulf %0, %0 : vector<8x128xf32>
    %cst = arith.constant dense<0.000000e+00> : vector<8xf32>
    %2 = vector.multi_reduction <add>, %1, %cst [1] : vector<8x128xf32> to vector<8xf32>
    %3 = vector.shape_cast %2 : vector<8xf32> to vector<8x1xf32>
    %4 = arith.truncf %0 : vector<8x128xf32> to vector<8x128xbf16>
    %c0_1 = arith.constant 0 : index
    %c0_2 = arith.constant 0 : index
    %5 = vector.load %arg2[%c0_1, %c0_2] : memref<128x128xbf16, #tpu.memory_space<vmem>>, vector<128x128xbf16>
    %cst_3 = arith.constant dense<0.000000e+00> : vector<8x128xf32>
    %6 = tpu.matmul %4, %5, %cst_3 {dimension_numbers = #tpu.dot_dimension_numbers<[1], [0], [0], [1], [0, 0, 1, 1], [], []>} : vector<8x128xbf16>, vector<128x128xbf16>, vector<8x128xf32> -> vector<8x128xf32>
    %c0_4 = arith.constant 0 : index
    %c0_5 = arith.constant 0 : index
    %7 = vector.load %arg3[%c0_4, %c0_5] : memref<1x128xf32, #tpu.memory_space<vmem>>, vector<1x128xf32>
    %8 = vector.broadcast %3 : vector<8x1xf32> to vector<8x128xf32>
    %9 = vector.broadcast %7 : vector<1x128xf32> to vector<8x128xf32>
    %10 = arith.addf %8, %9 : vector<8x128xf32>
    %11 = arith.subf %10, %6 : vector<8x128xf32>
    %cst_6 = arith.constant 0.000000e+00 : f32
    %12 = vector.broadcast %cst_6 : f32 to vector<8x128xf32>
    %13 = arith.maximumf %11, %12 : vector<8x128xf32>
    %14 = math.sqrt %13 : vector<8x128xf32>
    %cst_7 = arith.constant 0.000000e+00 : f32
    %15 = vector.broadcast %cst_7 : f32 to vector<8x128xf32>
    %16 = arith.subf %15, %14 : vector<8x128xf32>
    %cst_8 = arith.constant 1.000000e+00 : f32
    %17 = vector.broadcast %cst_8 : f32 to vector<8x128xf32>
    %18 = arith.mulf %16, %17 : vector<8x128xf32>
    %cst_9 = arith.constant dense<0xFF800000> : vector<8xf32>
    %19 = vector.multi_reduction <maximumf>, %18, %cst_9 [1] : vector<8x128xf32> to vector<8xf32>
    %20 = vector.shape_cast %19 : vector<8xf32> to vector<8x1xf32>
    %21 = vector.broadcast %20 : vector<8x1xf32> to vector<8x128xf32>
    %22 = arith.subf %18, %21 : vector<8x128xf32>
    %23 = math.exp %22 : vector<8x128xf32>
    %cst_10 = arith.constant dense<0.000000e+00> : vector<8xf32>
    %24 = vector.multi_reduction <add>, %23, %cst_10 [1] : vector<8x128xf32> to vector<8xf32>
    %25 = vector.shape_cast %24 : vector<8xf32> to vector<8x1xf32>
    %26 = tpu.reciprocal %25 {approx = true} : vector<8x1xf32> -> vector<8x1xf32>
    %27 = arith.mulf %25, %26 : vector<8x1xf32>
    %cst_11 = arith.constant 2.000000e+00 : f32
    %28 = vector.broadcast %cst_11 : f32 to vector<8x1xf32>
    %29 = arith.subf %28, %27 : vector<8x1xf32>
    %30 = arith.mulf %26, %29 : vector<8x1xf32>
    %31 = vector.broadcast %30 : vector<8x1xf32> to vector<8x128xf32>
    %32 = arith.mulf %23, %31 : vector<8x128xf32>
    %c0_12 = arith.constant 0 : index
    %c0_13 = arith.constant 0 : index
    %33 = vector.load %arg4[%c0_12, %c0_13] : memref<8x128xf32, #tpu.memory_space<vmem>>, vector<8x128xf32>
    tpu.vector_store %arg4[%c0_12, %c0_13], %32 {strides = array<i32>} : memref<8x128xf32, #tpu.memory_space<vmem>>, vector<8x128xf32>,
    return
  }
  func.func @transform_0(%arg0: i32) -> (i32, i32) {
    %c0_i32 = arith.constant 0 : i32
    %c0_i32_0 = arith.constant 0 : i32
    return %arg0, %c0_i32 : i32, i32
  }
  func.func @transform_1(%arg0: i32) -> (i32, i32) {
    %c0_i32 = arith.constant 0 : i32
    %c0_i32_0 = arith.constant 0 : i32
    %c0_i32_1 = arith.constant 0 : i32
    return %c0_i32, %c0_i32_0 : i32, i32
  }
  func.func @transform_2(%arg0: i32) -> (i32, i32) {
    %c0_i32 = arith.constant 0 : i32
    %c0_i32_0 = arith.constant 0 : i32
    %c0_i32_1 = arith.constant 0 : i32
    return %c0_i32, %c0_i32_0 : i32, i32
  }
  func.func @transform_3(%arg0: i32) -> (i32, i32) {
    %c0_i32 = arith.constant 0 : i32
    %c0_i32_0 = arith.constant 0 : i32
    return %arg0, %c0_i32 : i32, i32
  }
}

</mosaic_0001>

<bundles_post_ra>
// kernel: tpu_custom_call.1
= control target key start
LH: loop header
LB: loop body
LE: loop exit
PB: predicated region body
PF: predicated region fallthrough
CT: control target
= control target key end

     0   :  { %8 = vsyncpa [#allocation3], 0  ;;  %s345_s0 = inlined_call_operand.hbm [shape: f32[8,128], index: 0, kind: input, shape index: {}]   ;;  %s346_s1 = inlined_call_operand.hbm [shape: bf16[128,128], index: 1, kind: input, shape index: {}]   ;;  %s347_s2 = inlined_call_operand.vmem [shape: f32[1,128], index: 2, kind: input, shape index: {}]   ;;  %s348_s3 = inlined_call_operand.hbm [shape: f32[8,128], index: 3, kind: output, shape index: {}]  }
   0x1   :  { %9 = vsyncpa [#allocation6], 0 }
   0x2   :  { %10 = vsyncpa [#allocation4], 0  ;;  %s16_s14 = sshll.u32 %s345_s0, 4  ;;  %s308_s15 = smov [#allocation2]   ;;  %s17_s14 = int_to_ptr.hbm [resolvable:$true] %s16_s14 }
   0x3   :  { %s18_s16 = sshll.u32 %s308_s15, 4  ;;  %s26_s19 = sshll.u32 %s346_s1, 4  ;;  %s19_s16 = int_to_ptr.vmem [resolvable:$true] %s18_s16  ;;  %s27_s19 = int_to_ptr.hbm [resolvable:$true] %s26_s19 }
   0x4   :  { %21 = dma.hbm_to_vmem [thread:$0]  %s17_s14, 128, %s19_s16, [#allocation3]  }
   0x5   :  { %s309_s20 = smov [#allocation5]   ;;  %s310_s22 = smov 64  }
   0x6   :  { %s28_s21 = sshll.u32 %s309_s20, 4  ;;  %s311_s23 = smov 4   ;;  %s29_s21 = int_to_ptr.vmem [resolvable:$true] %s28_s21 }
   0x7   :  { %34 = dma.hbm_to_vmem [thread:$0]  %s27_s19, 1024, %s29_s21, [#allocation6], %s310_s22, %s310_s22, %s311_s23  }
   0x8   :  { %302 = dma.done.wait [#allocation3], 128  }
   0x9   :  { %303 = vsyncadd [#allocation3], 4294967168 }
   0xa   :  { %304 = dma.done.wait [#allocation6], 1024  }
   0xb   :  { %305 = vsyncadd [#allocation6], 4294966272  ;;  %v217_v0 = vld [vmem:[#allocation5 + $0x38] sm:$0xff]  ;;  %v216_v1 = vld [vmem:[#allocation5 + $0x30] sm:$0xff]  ;;  %s167_s27 = sshll.u32 %s348_s3, 4  ;;  %s168_s27 = int_to_ptr.hbm [resolvable:$true] %s167_s27 }
   0xc   :  { %114 = vmatpush.bf16.msra.mxu0 %v217_v0  ;;  %v45_v2 = vld [vmem:[#allocation2] sm:$0xff]  ;;  %v215_v4 = vld [vmem:[#allocation5 + $0x28] sm:$0xff]  ;;  %v214_v5 = vld [vmem:[#allocation5 + $0x20] sm:$0xff] }
   0xd   :  { %v46_v3 = vmul.f32 %v45_v2, %v45_v2  ;;  %v213_v6 = vld [vmem:[#allocation5 + $0x18] sm:$0xff]  ;;  %v212_v7 = vld [vmem:[#allocation5 + $0x10] sm:$0xff]  ;;  %v211_v8 = vld [vmem:[#allocation5 + $0x8] sm:$0xff]  ;;  %v49_v10 = vpack.c.bf16 %v45_v2, %v45_v2 }
   0xe   :  { %v210_v9 = vld [vmem:[#allocation5] sm:$0xff]  ;;  %v223_v11 = vld [vmem:[%s347_s2] ss:$0 sm:$0xff]  ;;  %s312_s2 = smov [#allocation7]  }
   0xf   :  { %47 = vadd.xlane.f32.xlu0 %v46_v3  ;;  %s165_s24 = sshll.u32 %s312_s2, 4  ;;  %s166_s24 = int_to_ptr.vmem [resolvable:$true] %s165_s24 }
  0x10   :  { %115 = vmatpush.bf16.msra.mxu0 %v216_v1 }
  0x14   :  { %116 = vmatpush.bf16.msra.mxu0 %v215_v4 }
  0x18   :  { %117 = vmatpush.bf16.msra.mxu0 %v214_v5 }
  0x1c   :  { %118 = vmatpush.bf16.msra.mxu0 %v213_v6 }
  0x20   :  { %119 = vmatpush.bf16.msra.mxu0 %v212_v7 }
  0x24   :  { %120 = vmatpush.bf16.msra.mxu0 %v211_v8 }
  0x28   :  { %121 = vmatpush.bf16.msra.mxu0 %v210_v9 }
  0x2b   :  { %122 = vmatmul.bf16.vlgmr.msra.gmra.mxu0 %v49_v10 }
  0x82   :  { %v48_v12 = vpop.xlane.xlu0 %47 }
  0x83   :  { %v131_v13 = vadd.f32 %v223_v11, %v48_v12 }
  0xa8   :  { %v123_v14 = vpop.f32.mrf.mxu0 }
  0xa9   :  { %v132_v15 = vsub.f32 %v131_v13, %v123_v14 }
  0xab   :  { %v133_v16 = vmax.f32 %v132_v15, 0.0 }
  0xad   :  { %224 = vrsqrt.f32 %v133_v16  ;;  %vm141_vm0 = vcmp.eq.f32.partialorder %v133_v16, inf  ;;  %v144_v25 = vand.u32 2147483648, %v133_v16  ;;  %vm143_vm1 = vcmp.eq.f32.partialorder %v133_v16, 0.0 }
  0xb0   :  { %v125_v17 = vpop.f32.mrf.mxu0 }
  0xb3   :  { %v225_v18 = vpop.eup %224 }
  0xb4   :  { %v135_v19 = vmul.f32 %v225_v18, %v133_v16 }
  0xb6   :  { %v136_v20 = vmul.f32 %v225_v18, %v135_v19 }
  0xb8   :  { %v137_v21 = vmul.f32 0.5, %v136_v20 }
  0xba   :  { %v138_v22 = vsub.f32 1.5, %v137_v21 }
  0xbc   :  { %v139_v23 = vmul.f32 %v225_v18, %v138_v22 }
  0xbe   :  { %v140_v24 = vmul.f32 %v139_v23, %v133_v16 }
  0xc0   :  { %v142_v26 = vsel %vm141_vm0, %v133_v16, %v140_v24 }
  0xc1   :  { %v145_v27 = vsel %vm143_vm1, %v144_v25, %v142_v26 }
  0xc2   :  { %v146_v28 = vsub.f32 0.0, %v145_v27 }
  0xc4   :  { %147 = vmax.xlane.f32.xlu0 %v146_v28 }
 0x137   :  { %v148_v29 = vpop.xlane.xlu0 %147 }
 0x138   :  { %v149_v30 = vsub.f32 %v146_v28, %v148_v29 }
 0x13a   :  { %v150_v31 = vmul.f32 1.442695, %v149_v30 }
 0x13c   :  { %226 = vpow2.f32 %v150_v31 }
 0x142   :  { %v227_v32 = vpop.eup %226 }
 0x143   :  { %152 = vadd.xlane.f32.xlu1 %v227_v32 }
 0x1b6   :  { %v153_v33 = vpop.xlane.xlu1 %152 }
 0x1b7   :  { %228 = vrcp.f32 %v153_v33 }
 0x1bd   :  { %v229_v34 = vpop.eup %228 }
 0x1be   :  { %v155_v35 = vmul.f32 %v229_v34, %v153_v33 }
 0x1c0   :  { %v156_v36 = vsub.f32 2.0, %v155_v35 }
 0x1c2   :  { %v157_v37 = vmul.f32 %v229_v34, %v156_v36 }
 0x1c4   :  { %v158_v38 = vmul.f32 %v227_v32, %v157_v37 }
 0x1c6   :  { %159 = vst [vmem:[#allocation7] sm:$0xff] %v158_v38 }
 0x1c7   :  { %170 = dma.vmem_to_hbm [thread:$0]  %s166_s24, 128, %s168_s27, [#allocation4]  }
 0x1c8   :  { %306 = dma.done.wait [#allocation4], 128  }
 0x1c9   :  { %307 = vsyncadd [#allocation4], 4294967168 }
 0x1ca   :  { %175 = vsyncpa [#allocation3], 1 }
 0x1cb   :  { %176 = vsyncpa [#allocation6], 1 }
 0x1cc   :  { %177 = vsyncpa [#allocation4], 1 }

</bundles_post_ra>
